<compile_context>
chip_gen: v7x
topology: tpu7x:2x2x1
jax: 0.10.0
libtpu: 0.0.40
codegen_flags: <defaults>
</compile_context>

<pallas_src>
import functools

import jax
import jax.numpy as jnp
from jax.experimental import pallas as pl
from jax.experimental.pallas import tpu as pltpu

HIDDEN = 768        # bert-base hidden_size
FC1 = 256
FC2 = 32
FC2_PAD = 128       # lane-dense padded width for fc2 output
NUM_LABELS = 8
LABELS_PAD = 128    # lane-dense padded width for classifier output
DROPOUT_PROB = 0.1  # identity at inference


def _round_up(n, m):
    return ((n + m - 1) // m) * m


def mlp_head_kernel(x_ref, w1_ref, b1_ref, w2_ref, b2_ref, w3_ref, b3_ref,
                    out_ref):
    """Fused fc1 -> ReLU -> fc2 -> ReLU -> classifier for one batch tile."""
    x = x_ref[...]                                                # (TB, H) bf16
    h1 = jnp.dot(x, w1_ref[...],
                 preferred_element_type=jnp.float32) + b1_ref[...]     # (TB, 256) f32
    h1 = jnp.maximum(h1, 0.0).astype(jnp.bfloat16)                # ReLU, bf16 for MXU
    # dropout: identity at inference
    h2 = jnp.dot(h1, w2_ref[...],
                 preferred_element_type=jnp.float32) + b2_ref[...]     # (TB, 128) f32
    h2 = jnp.maximum(h2, 0.0).astype(jnp.bfloat16)                # ReLU
    # dropout: identity at inference
    logits = jnp.dot(h2, w3_ref[...],
                     preferred_element_type=jnp.float32) + b3_ref[...]  # (TB, 128) f32
    out_ref[...] = logits.astype(out_ref.dtype)


def mlp_head(x, params, *, num_labels=NUM_LABELS, tb=128):
    """x: (B, HIDDEN) float32/bfloat16. params: padded bf16/f32 tuple.

    Returns logits (B, num_labels) float32.
    """
    w1, b1, w2, b2, w3, b3 = params
    B, H = x.shape
    assert H == HIDDEN

    # Pick the effective batch tile:
    #  - large batches: tb rows per step (>=2 steps -> megacore-friendly)
    #  - medium batches (17..tb): split into 2 tiles so v7x's 2 TCs both run
    #  - tiny batches: one tile covering the (8-rounded) batch
    if B > tb:
        tb_eff = tb
    elif B > 16:
        tb_eff = _round_up(pl.cdiv(B, 2), 8)
    else:
        tb_eff = max(8, _round_up(B, 8))

    B_pad = _round_up(B, tb_eff)
    if B_pad != B:
        x = jnp.pad(x, ((0, B_pad - B), (0, 0)))
    x = x.astype(jnp.bfloat16)

    grid = (B_pad // tb_eff,)
    out_padded = pl.pallas_call(
        mlp_head_kernel,
        out_shape=jax.ShapeDtypeStruct((B_pad, LABELS_PAD), jnp.float32),
        grid_spec=pl.GridSpec(
            grid=grid,
            in_specs=[
                pl.BlockSpec((tb_eff, H), lambda i: (i, 0)),          # x tile
                pl.BlockSpec((H, FC1), lambda i: (0, 0)),             # w1 (resident)
                pl.BlockSpec((1, FC1), lambda i: (0, 0)),             # b1
                pl.BlockSpec((FC1, FC2_PAD), lambda i: (0, 0)),       # w2 (padded)
                pl.BlockSpec((1, FC2_PAD), lambda i: (0, 0)),         # b2
                pl.BlockSpec((FC2_PAD, LABELS_PAD), lambda i: (0, 0)),  # w3 (padded)
                pl.BlockSpec((1, LABELS_PAD), lambda i: (0, 0)),      # b3
            ],
            out_specs=pl.BlockSpec((tb_eff, LABELS_PAD), lambda i: (i, 0)),
        ),
        compiler_params=pltpu.CompilerParams(
            dimension_semantics=("parallel",)),
    )(x, w1, b1, w2, b2, w3, b3)

    # Strip batch padding and the padded (all-zero) logit columns.
    return out_padded[:B, :num_labels]


def cross_entropy_loss(logits, labels):
    """Matches torch.nn.CrossEntropyLoss (mean reduction) — plain-JAX glue."""
    logz = jax.nn.logsumexp(logits, axis=-1)
    ll = jnp.take_along_axis(logits, labels[:, None], axis=-1)[:, 0]
    return jnp.mean(logz - ll)


def init_params(key, num_labels=NUM_LABELS):
    """Deterministic synthetic parameters with PyTorch-Linear-like scaling.

    Stored (in_features, out_features) so the kernel computes y = x @ W + b.
    """
    ks = jax.random.split(key, 6)

    def lin(kw, kb, fan_in, fan_out):
        bound = 1.0 / jnp.sqrt(fan_in)
        w = jax.random.uniform(kw, (fan_in, fan_out), jnp.float32, -bound, bound)
        b = jax.random.uniform(kb, (1, fan_out), jnp.float32, -bound, bound)
        return w, b

    w1, b1 = lin(ks[0], ks[1], HIDDEN, FC1)
    w2, b2 = lin(ks[2], ks[3], FC1, FC2)
    w3, b3 = lin(ks[4], ks[5], FC2, num_labels)
    return w1, b1, w2, b2, w3, b3


def prepare_params(params):
    """Zero-pad narrow trailing dims to lane width and cast weights to bf16.

    Padding is exact: padded b2 = 0 -> ReLU(0) = 0, and the corresponding
    padded rows of w3 are 0, so padded channels never contribute.  Padded
    logit columns are exactly b3_pad = 0 and are sliced off in the wrapper.
    """
    w1, b1, w2, b2, w3, b3 = params
    num_labels = w3.shape[1]

    w2p = jnp.zeros((FC1, FC2_PAD), jnp.float32).at[:, :FC2].set(w2)
    b2p = jnp.zeros((1, FC2_PAD), jnp.float32).at[:, :FC2].set(b2)
    w3p = jnp.zeros((FC2_PAD, LABELS_PAD), jnp.float32).at[:FC2, :num_labels].set(w3)
    b3p = jnp.zeros((1, LABELS_PAD), jnp.float32).at[:, :num_labels].set(b3)

    return (w1.astype(jnp.bfloat16), b1,
            w2p.astype(jnp.bfloat16), b2p,
            w3p.astype(jnp.bfloat16), b3p)


def reference_forward(x, params):
    """Plain-JAX forward with the same bf16-operand / f32-accumulate recipe."""
    w1, b1, w2, b2, w3, b3 = params
    xb = x.astype(jnp.bfloat16)
    h1 = jnp.dot(xb, w1.astype(jnp.bfloat16),
                 preferred_element_type=jnp.float32) + b1
    h1 = jnp.maximum(h1, 0.0).astype(jnp.bfloat16)
    h2 = jnp.dot(h1, w2.astype(jnp.bfloat16),
                 preferred_element_type=jnp.float32) + b2
    h2 = jnp.maximum(h2, 0.0).astype(jnp.bfloat16)
    return jnp.dot(h2, w3.astype(jnp.bfloat16),
                   preferred_element_type=jnp.float32) + b3


if __name__ == "__main__":
    key = jax.random.PRNGKey(0)
    k_x, k_p, k_lbl = jax.random.split(key, 3)

    B = 8
    # synthetic stand-in for bert(...).pooler_output (tanh-squashed in BERT)
    pooled_output = jnp.tanh(
        jax.random.normal(k_x, (B, HIDDEN), dtype=jnp.float32))
    labels = jax.random.randint(k_lbl, (B,), 0, NUM_LABELS)

    raw_params = init_params(k_p)
    padded_params = prepare_params(raw_params)

    logits = mlp_head(pooled_output, padded_params, num_labels=NUM_LABELS)
    logits = jax.block_until_ready(logits)
    assert logits.shape == (B, NUM_LABELS)

    # reference check against plain-JAX forward with the same bf16/f32 recipe
    ref = reference_forward(pooled_output, raw_params)
    assert jnp.allclose(logits, ref, atol=1e-2, rtol=1e-2)

    # also sanity-check against the pure-f32 reference (loose tolerance: bf16)
    w1, b1, w2, b2, w3, b3 = raw_params
    h = jnp.maximum(pooled_output @ w1 + b1, 0.0)
    h = jnp.maximum(h @ w2 + b2, 0.0)
    ref_f32 = h @ w3 + b3
    assert jnp.allclose(logits, ref_f32, atol=5e-2, rtol=5e-2)

    # labels path (loss computed in plain-JAX glue, matches CrossEntropyLoss)
    loss = jax.block_until_ready(cross_entropy_loss(logits, labels))
    assert jnp.isfinite(loss)

    # exercise a non-tile-aligned, larger batch to verify padding/tiling path
    B2 = 300
    x2 = jnp.tanh(jax.random.normal(jax.random.PRNGKey(1), (B2, HIDDEN),
                                    dtype=jnp.float32))
    logits2 = jax.block_until_ready(
        mlp_head(x2, padded_params, num_labels=NUM_LABELS))
    assert logits2.shape == (B2, NUM_LABELS)
    ref2 = reference_forward(x2, raw_params)
    assert jnp.allclose(logits2, ref2, atol=1e-2, rtol=1e-2)

    print("KERNEL_OK")
</pallas_src>

<mosaic_0001>
module attributes {stable_mosaic.version = 11 : i64} {
  func.func @mlp_head_kernel(%arg0: i32, %arg1: memref<8x768xbf16, #tpu.memory_space<vmem>>, %arg2: memref<768x256xbf16, #tpu.memory_space<vmem>>, %arg3: memref<1x256xf32, #tpu.memory_space<vmem>>, %arg4: memref<256x128xbf16, #tpu.memory_space<vmem>>, %arg5: memref<1x128xf32, #tpu.memory_space<vmem>>, %arg6: memref<128x128xbf16, #tpu.memory_space<vmem>>, %arg7: memref<1x128xf32, #tpu.memory_space<vmem>>, %arg8: memref<8x128xf32, #tpu.memory_space<vmem>>) attributes {dimension_semantics = [#tpu.dimension_semantics<parallel>], iteration_bounds = array<i64: 1>, scalar_prefetch = 0 : i64, scratch_operands = 0 : i64, tpu.core_type = #tpu.core_type<tc>, window_params = [{transform_indices = @transform_0, window_bounds = array<i64: 8, 768>}, {pipeline_mode = #tpu.pipeline_mode<synchronous>, transform_indices = @transform_1, window_bounds = array<i64: 768, 256>}, {pipeline_mode = #tpu.pipeline_mode<synchronous>, transform_indices = @transform_2, window_bounds = array<i64: 1, 256>}, {pipeline_mode = #tpu.pipeline_mode<synchronous>, transform_indices = @transform_3, window_bounds = array<i64: 256, 128>}, {pipeline_mode = #tpu.pipeline_mode<synchronous>, transform_indices = @transform_4, window_bounds = array<i64: 1, 128>}, {pipeline_mode = #tpu.pipeline_mode<synchronous>, transform_indices = @transform_5, window_bounds = array<i64: 128, 128>}, {pipeline_mode = #tpu.pipeline_mode<synchronous>, transform_indices = @transform_6, window_bounds = array<i64: 1, 128>}, {transform_indices = @transform_7, window_bounds = array<i64: 8, 128>}]} {
    %c0 = arith.constant 0 : index
    %c0_0 = arith.constant 0 : index
    %0 = vector.load %arg1[%c0, %c0_0] : memref<8x768xbf16, #tpu.memory_space<vmem>>, vector<8x768xbf16>
    %c0_1 = arith.constant 0 : index
    %c0_2 = arith.constant 0 : index
    %1 = vector.load %arg2[%c0_1, %c0_2] : memref<768x256xbf16, #tpu.memory_space<vmem>>, vector<768x256xbf16>
    %cst = arith.constant dense<0.000000e+00> : vector<8x256xf32>
    %2 = tpu.matmul %0, %1, %cst {dimension_numbers = #tpu.dot_dimension_numbers<[1], [0], [0], [1], [0, 0, 1, 1], [], []>} : vector<8x768xbf16>, vector<768x256xbf16>, vector<8x256xf32> -> vector<8x256xf32>
    %c0_3 = arith.constant 0 : index
    %c0_4 = arith.constant 0 : index
    %3 = vector.load %arg3[%c0_3, %c0_4] : memref<1x256xf32, #tpu.memory_space<vmem>>, vector<1x256xf32>
    %4 = vector.broadcast %3 : vector<1x256xf32> to vector<8x256xf32>
    %5 = arith.addf %2, %4 : vector<8x256xf32>
    %cst_5 = arith.constant 0.000000e+00 : f32
    %6 = vector.broadcast %cst_5 : f32 to vector<8x256xf32>
    %7 = arith.maximumf %5, %6 : vector<8x256xf32>
    %8 = arith.truncf %7 : vector<8x256xf32> to vector<8x256xbf16>
    %c0_6 = arith.constant 0 : index
    %c0_7 = arith.constant 0 : index
    %9 = vector.load %arg4[%c0_6, %c0_7] : memref<256x128xbf16, #tpu.memory_space<vmem>>, vector<256x128xbf16>
    %cst_8 = arith.constant dense<0.000000e+00> : vector<8x128xf32>
    %10 = tpu.matmul %8, %9, %cst_8 {dimension_numbers = #tpu.dot_dimension_numbers<[1], [0], [0], [1], [0, 0, 1, 1], [], []>} : vector<8x256xbf16>, vector<256x128xbf16>, vector<8x128xf32> -> vector<8x128xf32>
    %c0_9 = arith.constant 0 : index
    %c0_10 = arith.constant 0 : index
    %11 = vector.load %arg5[%c0_9, %c0_10] : memref<1x128xf32, #tpu.memory_space<vmem>>, vector<1x128xf32>
    %12 = vector.broadcast %11 : vector<1x128xf32> to vector<8x128xf32>
    %13 = arith.addf %10, %12 : vector<8x128xf32>
    %cst_11 = arith.constant 0.000000e+00 : f32
    %14 = vector.broadcast %cst_11 : f32 to vector<8x128xf32>
    %15 = arith.maximumf %13, %14 : vector<8x128xf32>
    %16 = arith.truncf %15 : vector<8x128xf32> to vector<8x128xbf16>
    %c0_12 = arith.constant 0 : index
    %c0_13 = arith.constant 0 : index
    %17 = vector.load %arg6[%c0_12, %c0_13] : memref<128x128xbf16, #tpu.memory_space<vmem>>, vector<128x128xbf16>
    %cst_14 = arith.constant dense<0.000000e+00> : vector<8x128xf32>
    %18 = tpu.matmul %16, %17, %cst_14 {dimension_numbers = #tpu.dot_dimension_numbers<[1], [0], [0], [1], [0, 0, 1, 1], [], []>} : vector<8x128xbf16>, vector<128x128xbf16>, vector<8x128xf32> -> vector<8x128xf32>
    %c0_15 = arith.constant 0 : index
    %c0_16 = arith.constant 0 : index
    %19 = vector.load %arg7[%c0_15, %c0_16] : memref<1x128xf32, #tpu.memory_space<vmem>>, vector<1x128xf32>
    %20 = vector.broadcast %19 : vector<1x128xf32> to vector<8x128xf32>
    %21 = arith.addf %18, %20 : vector<8x128xf32>
    %c0_17 = arith.constant 0 : index
    %c0_18 = arith.constant 0 : index
    %22 = vector.load %arg8[%c0_17, %c0_18] : memref<8x128xf32, #tpu.memory_space<vmem>>, vector<8x128xf32>
    tpu.vector_store %arg8[%c0_17, %c0_18], %21 {strides = array<i32>} : memref<8x128xf32, #tpu.memory_space<vmem>>, vector<8x128xf32>,
    return
  }
  func.func @transform_0(%arg0: i32) -> (i32, i32) {
    %c0_i32 = arith.constant 0 : i32
    %c0_i32_0 = arith.constant 0 : i32
    return %arg0, %c0_i32 : i32, i32
  }
  func.func @transform_1(%arg0: i32) -> (i32, i32) {
    %c0_i32 = arith.constant 0 : i32
    %c0_i32_0 = arith.constant 0 : i32
    %c0_i32_1 = arith.constant 0 : i32
    return %c0_i32, %c0_i32_0 : i32, i32
  }
  func.func @transform_2(%arg0: i32) -> (i32, i32) {
    %c0_i32 = arith.constant 0 : i32
    %c0_i32_0 = arith.constant 0 : i32
    %c0_i32_1 = arith.constant 0 : i32
    return %c0_i32, %c0_i32_0 : i32, i32
  }
  func.func @transform_3(%arg0: i32) -> (i32, i32) {
    %c0_i32 = arith.constant 0 : i32
    %c0_i32_0 = arith.constant 0 : i32
    %c0_i32_1 = arith.constant 0 : i32
    return %c0_i32, %c0_i32_0 : i32, i32
  }
  func.func @transform_4(%arg0: i32) -> (i32, i32) {
    %c0_i32 = arith.constant 0 : i32
    %c0_i32_0 = arith.constant 0 : i32
    %c0_i32_1 = arith.constant 0 : i32
    return %c0_i32, %c0_i32_0 : i32, i32
  }
  func.func @transform_5(%arg0: i32) -> (i32, i32) {
    %c0_i32 = arith.constant 0 : i32
    %c0_i32_0 = arith.constant 0 : i32
    %c0_i32_1 = arith.constant 0 : i32
    return %c0_i32, %c0_i32_0 : i32, i32
  }
  func.func @transform_6(%arg0: i32) -> (i32, i32) {
    %c0_i32 = arith.constant 0 : i32
    %c0_i32_0 = arith.constant 0 : i32
    %c0_i32_1 = arith.constant 0 : i32
    return %c0_i32, %c0_i32_0 : i32, i32
  }
  func.func @transform_7(%arg0: i32) -> (i32, i32) {
    %c0_i32 = arith.constant 0 : i32
    %c0_i32_0 = arith.constant 0 : i32
    return %arg0, %c0_i32 : i32, i32
  }
}

</mosaic_0001>

<bundles_post_ra>
// kernel: tpu_custom_call.1
= control target key start
LH: loop header
LB: loop body
LE: loop exit
PB: predicated region body
PF: predicated region fallthrough
CT: control target
= control target key end

     0   :  { %12 = vsyncpa [#allocation3], 0  ;;  %s1748_s0 = inlined_call_operand.hbm [shape: bf16[8,768], index: 0, kind: input, shape index: {}]   ;;  %s1749_s1 = inlined_call_operand.hbm [shape: bf16[768,256], index: 1, kind: input, shape index: {}]   ;;  %s1750_s2 = inlined_call_operand.vmem [shape: f32[1,256], index: 2, kind: input, shape index: {}]   ;;  %s1751_s3 = inlined_call_operand.hbm [shape: bf16[256,128], index: 3, kind: input, shape index: {}]   ;;  %s1752_s4 = inlined_call_operand.vmem [shape: f32[1,128], index: 4, kind: input, shape index: {}]   ;;  %s1753_s5 = inlined_call_operand.hbm [shape: bf16[128,128], index: 5, kind: input, shape index: {}]   ;;  %s1754_s6 = inlined_call_operand.vmem [shape: f32[1,128], index: 6, kind: input, shape index: {}]   ;;  %s1755_s7 = inlined_call_operand.hbm [shape: f32[8,128], index: 7, kind: output, shape index: {}]  }
   0x1   :  { %13 = vsyncpa [#allocation6], 0 }
   0x2   :  { %14 = vsyncpa [#allocation9], 0 }
   0x3   :  { %15 = vsyncpa [#allocation4], 0  ;;  %s1616_s24 = smov [#allocation5]   ;;  %s1498_s28 = scalar_lea.hbm %s1749_s1, 12288 }
   0x4   :  { %s31_s25 = sshll.u32 %s1616_s24, 4  ;;  %p1499_p0 = scmp.ne.s32.totalorder %s1749_s1, %s1498_s28  ;;  %s32_s25 = int_to_ptr.vmem [resolvable:$true] %s31_s25 }
   0x5   :  { %p1502_p1 = scmp.lt.u32.totalorder %s1498_s28, %s1749_s1 }
   0x7   :  { %p1504_p2 = pnand %p1502_p1, %p1499_p0 }
   0x9   :  { %1507 = shalt.err (!%p1504_p2)
}
   0xa   :  { %s1508_s10 = scalar_lea.vmem %s32_s25, 12288  ;;  %p1513_p4 = scmp.lt.s32.totalorder %s32_s25, %s32_s25 }
   0xb   :  { %p1509_p3 = scmp.ne.s32.totalorder %s32_s25, %s1508_s10  ;;  %p1514_p5 = scmp.lt.s32.totalorder %s1508_s10, %s1508_s10 }
   0xd   :  { %p1515_p6 = por %p1514_p5, %p1513_p4 }
   0xf   :  { %p1516_p7 = pnand %p1515_p6, %p1509_p3 }
  0x11   :  { %1519 = shalt.err (!%p1516_p7)
}
  0x12   :  { %s1617_s11 = smov 128   ;;  %s1618_s12 = smov 8  }
  0x13   :  { %37 = dma.hbm_to_vmem [thread:$0]  %s1749_s1, 12288, %s32_s25, [#allocation6], %s1617_s11, %s1617_s11, %s1618_s12  }
  0x14   :  { %s1619_s15 = smov [#allocation2]   ;;  %s1620_s17 = smov [#allocation7]  }
  0x15   :  { %s22_s16 = sshll.u32 %s1619_s15, 4  ;;  %s45_s18 = sshll.u32 %s1620_s17, 4  ;;  %s23_s16 = int_to_ptr.vmem [resolvable:$true] %s22_s16  ;;  %s46_s18 = int_to_ptr.vmem [resolvable:$true] %s45_s18 }
  0x16   :  { %s1520_s21 = scalar_lea.hbm %s1748_s0, 384 }
  0x17   :  { %p1521_p8 = scmp.ne.s32.totalorder %s1748_s0, %s1520_s21  ;;  %p1524_p9 = scmp.lt.u32.totalorder %s1520_s21, %s1748_s0 }
  0x19   :  { %p1526_p10 = pnand %p1524_p9, %p1521_p8 }
  0x1b   :  { %1529 = shalt.err (!%p1526_p10)
}
  0x1c   :  { %s1530_s1 = scalar_lea.vmem %s23_s16, 384  ;;  %p1535_p12 = scmp.lt.s32.totalorder %s23_s16, %s23_s16 }
  0x1d   :  { %p1531_p11 = scmp.ne.s32.totalorder %s23_s16, %s1530_s1  ;;  %p1536_p13 = scmp.lt.s32.totalorder %s1530_s1, %s1530_s1 }
  0x1f   :  { %p1537_p0 = por %p1536_p13, %p1535_p12 }
  0x21   :  { %p1538_p1 = pnand %p1537_p0, %p1531_p11 }
  0x23   :  { %1541 = shalt.err (!%p1538_p1)
}
  0x24   :  { %25 = dma.hbm_to_vmem [thread:$0]  %s1748_s0, 384, %s23_s16, [#allocation3]  }
  0x25   :  { %s1542_s30 = scalar_lea.hbm %s1751_s3, 2048 }
  0x26   :  { %p1543_p2 = scmp.ne.s32.totalorder %s1751_s3, %s1542_s30  ;;  %p1546_p3 = scmp.lt.u32.totalorder %s1542_s30, %s1751_s3 }
  0x28   :  { %p1548_p4 = pnand %p1546_p3, %p1543_p2 }
  0x2a   :  { %1551 = shalt.err (!%p1548_p4)
}
  0x2b   :  { %s1552_s12 = scalar_lea.vmem %s46_s18, 2048  ;;  %p1557_p6 = scmp.lt.s32.totalorder %s46_s18, %s46_s18 }
  0x2c   :  { %p1553_p5 = scmp.ne.s32.totalorder %s46_s18, %s1552_s12  ;;  %p1558_p7 = scmp.lt.s32.totalorder %s1552_s12, %s1552_s12 }
  0x2e   :  { %p1559_p8 = por %p1558_p7, %p1557_p6 }
  0x30   :  { %p1560_p9 = pnand %p1559_p8, %p1553_p5 }
  0x32   :  { %1563 = shalt.err (!%p1560_p9)
}
  0x33   :  { %s1621_s0 = smov 64   ;;  %s1622_s13 = smov 4  }
  0x34   :  { %51 = dma.hbm_to_vmem [thread:$0]  %s1751_s3, 2048, %s46_s18, [#allocation6], %s1621_s0, %s1621_s0, %s1622_s13  }
  0x35   :  { %s1623_s16 = smov [#allocation8]   ;;  %s1564_s21 = scalar_lea.hbm %s1753_s5, 1024 }
  0x36   :  { %s59_s17 = sshll.u32 %s1623_s16, 4  ;;  %p1565_p10 = scmp.ne.s32.totalorder %s1753_s5, %s1564_s21  ;;  %s60_s17 = int_to_ptr.vmem [resolvable:$true] %s59_s17 }
  0x37   :  { %p1568_p11 = scmp.lt.u32.totalorder %s1564_s21, %s1753_s5 }
  0x39   :  { %p1570_p12 = pnand %p1568_p11, %p1565_p10 }
  0x3b   :  { %1573 = shalt.err (!%p1570_p12)
}
  0x3c   :  { %s1574_s1 = scalar_lea.vmem %s60_s17, 1024  ;;  %p1579_p0 = scmp.lt.s32.totalorder %s60_s17, %s60_s17 }
  0x3d   :  { %p1575_p13 = scmp.ne.s32.totalorder %s60_s17, %s1574_s1  ;;  %p1580_p1 = scmp.lt.s32.totalorder %s1574_s1, %s1574_s1 }
  0x3f   :  { %p1581_p2 = por %p1580_p1, %p1579_p0 }
  0x41   :  { %p1582_p3 = pnand %p1581_p2, %p1575_p13 }
  0x43   :  { %1585 = shalt.err (!%p1582_p3)
}
  0x44   :  { %65 = dma.hbm_to_vmem [thread:$0]  %s1753_s5, 1024, %s60_s17, [#allocation9], %s1621_s0, %s1621_s0, %s1622_s13  }
  0x45   :  { %1608 = dma.done.wait [#allocation3], 384  }
  0x46   :  { %1609 = vsyncadd [#allocation3], 4294966912 }
  0x47   :  { %1610 = dma.done.wait [#allocation6], 14336  }
  0x48   :  { %1611 = vsyncadd [#allocation6], 4294952960 }
  0x49   :  { %1612 = dma.done.wait [#allocation9], 1024  }
  0x4a   :  { %1613 = vsyncadd [#allocation9], 4294966272  ;;  %v1324_v0 = vld [vmem:[#allocation5 + $0x104] ss:$8 sps:$4 sm:$0xff]   ;;  %v1326_v1 = vld [vmem:[#allocation5 + $0x100] ss:$8 sps:$4 sm:$0xff]  }
  0x4b   :  { %734 = vmatprep.subr.bf16.mxu0 %v1324_v0  ;;  %v1327_v2 = vld [vmem:[#allocation5 + $0x114] ss:$8 sps:$4 sm:$0xff]   ;;  %v1329_v3 = vld [vmem:[#allocation5 + $0x110] ss:$8 sps:$4 sm:$0xff]   ;;  %v1330_v4 = vld [vmem:[#allocation5 + $0x124] ss:$8 sps:$4 sm:$0xff]  }
  0x4c   :  { %735 = vmatpush1.bf16.msra.mxu0 %v1326_v1  ;;  %v1332_v5 = vld [vmem:[#allocation5 + $0x120] ss:$8 sps:$4 sm:$0xff]   ;;  %v1333_v6 = vld [vmem:[#allocation5 + $0x134] ss:$8 sps:$4 sm:$0xff]   ;;  %v1335_v7 = vld [vmem:[#allocation5 + $0x130] ss:$8 sps:$4 sm:$0xff]  }
  0x4d   :  { %736 = vmatprep.subr.bf16.mxu0 %v1327_v2  ;;  %v1336_v8 = vld [vmem:[#allocation5 + $0x144] ss:$8 sps:$4 sm:$0xff]   ;;  %v1338_v9 = vld [vmem:[#allocation5 + $0x140] ss:$8 sps:$4 sm:$0xff]   ;;  %v1339_v10 = vld [vmem:[#allocation5 + $0x154] ss:$8 sps:$4 sm:$0xff]  }
  0x4e   :  { %v1341_v11 = vld [vmem:[#allocation5 + $0x150] ss:$8 sps:$4 sm:$0xff]   ;;  %v1342_v12 = vld [vmem:[#allocation5 + $0x164] ss:$8 sps:$4 sm:$0xff]   ;;  %v1371_v14 = vld [vmem:[#allocation5] ss:$8 sps:$4 sm:$0xff]  }
  0x4f   :  { %v1369_v13 = vld [vmem:[#allocation5 + $0x4] ss:$8 sps:$4 sm:$0xff]   ;;  %v1344_v15 = vld [vmem:[#allocation5 + $0x160] ss:$8 sps:$4 sm:$0xff]   ;;  %v1345_v16 = vld [vmem:[#allocation5 + $0x174] ss:$8 sps:$4 sm:$0xff]  }
  0x50   :  { %737 = vmatpush1.bf16.msra.mxu0 %v1329_v3  ;;  %693 = vmatprep.subr.bf16.mxu1 %v1369_v13  ;;  %v1375_v17 = vld [vmem:[#allocation5 + $0x14] ss:$8 sps:$4 sm:$0xff]   ;;  %v1377_v18 = vld [vmem:[#allocation5 + $0x10] ss:$8 sps:$4 sm:$0xff]   ;;  %v1383_v22 = vld [vmem:[#allocation5 + $0x24] ss:$8 sps:$4 sm:$0xff]  }
  0x51   :  { %738 = vmatprep.subr.bf16.mxu0 %v1330_v4  ;;  %694 = vmatpush1.bf16.msra.mxu1 %v1371_v14  ;;  %v1715_v19 = vld [vmem:[#allocation2 + $0x8] sm:$0xff]  ;;  %v1385_v23 = vld [vmem:[#allocation5 + $0x20] ss:$8 sps:$4 sm:$0xff]   ;;  %v1348_v24 = vld [vmem:[#allocation5 + $0x184] ss:$8 sps:$4 sm:$0xff]   ;;  %vm1625_vm0 = vmmov 0  }
  0x52   :  { %695 = vmatprep.subr.bf16.mxu1 %v1375_v17  ;;  %v1129_v20 = vcombine.high %v1715_v19, %v1715_v19  ;;  %v1347_v21 = vld [vmem:[#allocation5 + $0x170] ss:$8 sps:$4 sm:$0xff]   ;;  %v1389_v25 = vld [vmem:[#allocation5 + $0x34] ss:$8 sps:$4 sm:$0xff]   ;;  %v1350_v26 = vld [vmem:[#allocation5 + $0x180] ss:$8 sps:$4 sm:$0xff]   ;;  %v1128_v58 = vcombine.low %v1715_v19, %v1715_v19 }
  0x53   :  { %v1351_v27 = vld [vmem:[#allocation5 + $0x194] ss:$8 sps:$4 sm:$0xff]   ;;  %v1391_v28 = vld [vmem:[#allocation5 + $0x30] ss:$8 sps:$4 sm:$0xff]   ;;  %v1395_v29 = vld [vmem:[#allocation5 + $0x44] ss:$8 sps:$4 sm:$0xff]  }
  0x54   :  { %739 = vmatpush1.bf16.msra.mxu0 %v1332_v5  ;;  %766 = vmatprep.mubr.bf16.mxu0 %v1129_v20  ;;  %v1353_v30 = vld [vmem:[#allocation5 + $0x190] ss:$8 sps:$4 sm:$0xff]   ;;  %v1354_v31 = vld [vmem:[#allocation5 + $0x1a4] ss:$8 sps:$4 sm:$0xff]   ;;  %v1397_v32 = vld [vmem:[#allocation5 + $0x40] ss:$8 sps:$4 sm:$0xff]  }
  0x55   :  { %740 = vmatprep.subr.bf16.mxu0 %v1333_v6  ;;  %696 = vmatpush1.bf16.msra.mxu1 %v1377_v18  ;;  %v1401_v33 = vld [vmem:[#allocation5 + $0x54] ss:$8 sps:$4 sm:$0xff]   ;;  %v1356_v34 = vld [vmem:[#allocation5 + $0x1a0] ss:$8 sps:$4 sm:$0xff]   ;;  %v1403_v36 = vld [vmem:[#allocation5 + $0x50] ss:$8 sps:$4 sm:$0xff]  }
  0x56   :  { %697 = vmatprep.subr.bf16.mxu1 %v1383_v22  ;;  %v1357_v35 = vld [vmem:[#allocation5 + $0x1b4] ss:$8 sps:$4 sm:$0xff]   ;;  %v1407_v37 = vld [vmem:[#allocation5 + $0x64] ss:$8 sps:$4 sm:$0xff]   ;;  %v1359_v38 = vld [vmem:[#allocation5 + $0x1b0] ss:$8 sps:$4 sm:$0xff]  }
  0x57   :  { %v1360_v39 = vld [vmem:[#allocation5 + $0x1c4] ss:$8 sps:$4 sm:$0xff]   ;;  %v1409_v40 = vld [vmem:[#allocation5 + $0x60] ss:$8 sps:$4 sm:$0xff]   ;;  %v1413_v41 = vld [vmem:[#allocation5 + $0x74] ss:$8 sps:$4 sm:$0xff]  }
  0x58   :  { %741 = vmatpush1.bf16.msra.mxu0 %v1335_v7  ;;  %v1362_v42 = vld [vmem:[#allocation5 + $0x1c0] ss:$8 sps:$4 sm:$0xff]   ;;  %v1363_v43 = vld [vmem:[#allocation5 + $0x1d4] ss:$8 sps:$4 sm:$0xff]   ;;  %v1415_v44 = vld [vmem:[#allocation5 + $0x70] ss:$8 sps:$4 sm:$0xff]  }
  0x59   :  { %742 = vmatprep.subr.bf16.mxu0 %v1336_v8  ;;  %698 = vmatpush1.bf16.msra.mxu1 %v1385_v23  ;;  %v1419_v45 = vld [vmem:[#allocation5 + $0x84] ss:$8 sps:$4 sm:$0xff]   ;;  %v1365_v46 = vld [vmem:[#allocation5 + $0x1d0] ss:$8 sps:$4 sm:$0xff]   ;;  %v1421_v48 = vld [vmem:[#allocation5 + $0x80] ss:$8 sps:$4 sm:$0xff]  }
  0x5a   :  { %699 = vmatprep.subr.bf16.mxu1 %v1389_v25  ;;  %v1366_v47 = vld [vmem:[#allocation5 + $0x1e4] ss:$8 sps:$4 sm:$0xff]   ;;  %v1425_v49 = vld [vmem:[#allocation5 + $0x94] ss:$8 sps:$4 sm:$0xff]   ;;  %v1368_v50 = vld [vmem:[#allocation5 + $0x1e0] ss:$8 sps:$4 sm:$0xff]  }
  0x5b   :  { %v1372_v51 = vld [vmem:[#allocation5 + $0x1f4] ss:$8 sps:$4 sm:$0xff]   ;;  %v1427_v52 = vld [vmem:[#allocation5 + $0x90] ss:$8 sps:$4 sm:$0xff]   ;;  %v1431_v53 = vld [vmem:[#allocation5 + $0xa4] ss:$8 sps:$4 sm:$0xff]  }
  0x5c   :  { %743 = vmatpush1.bf16.msra.mxu0 %v1338_v9  ;;  %v1374_v54 = vld [vmem:[#allocation5 + $0x1f0] ss:$8 sps:$4 sm:$0xff]   ;;  %v1382_v55 = vld [vmem:[#allocation5 + $0x204] ss:$8 sps:$4 sm:$0xff]   ;;  %v1433_v56 = vld [vmem:[#allocation5 + $0xa0] ss:$8 sps:$4 sm:$0xff]  }
  0x5d   :  { %744 = vmatprep.subr.bf16.mxu0 %v1339_v10  ;;  %700 = vmatpush1.bf16.msra.mxu1 %v1391_v28  ;;  %v1437_v57 = vld [vmem:[#allocation5 + $0xb4] ss:$8 sps:$4 sm:$0xff]   ;;  %v1380_v59 = vld [vmem:[#allocation5 + $0x200] ss:$8 sps:$4 sm:$0xff]   ;;  %v1439_v60 = vld [vmem:[#allocation5 + $0xb0] ss:$8 sps:$4 sm:$0xff]  }
  0x5e   :  { %701 = vmatprep.subr.bf16.mxu1 %v1395_v29  ;;  %v81_v61 = vld [vmem:[#allocation2] sm:$0xff]  ;;  %v1388_v62 = vld [vmem:[#allocation5 + $0x214] ss:$8 sps:$4 sm:$0xff]   ;;  %v1386_v2 = vld [vmem:[#allocation5 + $0x210] ss:$8 sps:$4 sm:$0xff]   ;;  %s1626_s30 = smov [#allocation10]  }
  0x5f   :  { %v1443_v63 = vld [vmem:[#allocation5 + $0xc4] ss:$8 sps:$4 sm:$0xff]   ;;  %v1127_v0 = vcombine.high %v81_v61, %v81_v61  ;;  %v1721_v1 = vld [vmem:[#allocation2 + $0x10] sm:$0xff]  ;;  %v1445_v5 = vld [vmem:[#allocation5 + $0xc0] ss:$8 sps:$4 sm:$0xff]   ;;  %v1126_v22 = vcombine.low %v81_v61, %v81_v61  ;;  %s1115_s8 = sshll.u32 %s1626_s30, 4  ;;  %s1116_s8 = int_to_ptr.vmem [resolvable:$true] %s1115_s8 }
  0x60   :  { %745 = vmatpush1.bf16.msra.mxu0 %v1341_v11  ;;  %v1131_v3 = vcombine.high %v1721_v1, %v1721_v1  ;;  %v1394_v4 = vld [vmem:[#allocation5 + $0x224] ss:$8 sps:$4 sm:$0xff]   ;;  %v1449_v6 = vld [vmem:[#allocation5 + $0xd4] ss:$8 sps:$4 sm:$0xff]   ;;  %v1392_v7 = vld [vmem:[#allocation5 + $0x220] ss:$8 sps:$4 sm:$0xff]   ;;  %p1591_p5 = scmp.lt.s32.totalorder %s1116_s8, %s1116_s8 }
  0x61   :  { %746 = vmatprep.subr.bf16.mxu0 %v1342_v12  ;;  %702 = vmatpush1.bf16.msra.mxu1 %v1397_v32  ;;  %v1400_v8 = vld [vmem:[#allocation5 + $0x234] ss:$8 sps:$4 sm:$0xff]   ;;  %v1451_v9 = vld [vmem:[#allocation5 + $0xd0] ss:$8 sps:$4 sm:$0xff]   ;;  %v1455_v10 = vld [vmem:[#allocation5 + $0xe4] ss:$8 sps:$4 sm:$0xff]  }
  0x62   :  { %703 = vmatprep.subr.bf16.mxu1 %v1401_v33  ;;  %725 = vmatprep.mubr.bf16.mxu1 %v1127_v0  ;;  %v1398_v11 = vld [vmem:[#allocation5 + $0x230] ss:$8 sps:$4 sm:$0xff]   ;;  %v1406_v12 = vld [vmem:[#allocation5 + $0x244] ss:$8 sps:$4 sm:$0xff]   ;;  %v1457_v13 = vld [vmem:[#allocation5 + $0xe0] ss:$8 sps:$4 sm:$0xff]  }
  0x63   :  { %v1461_v14 = vld [vmem:[#allocation5 + $0xf4] ss:$8 sps:$4 sm:$0xff]   ;;  %v1474_v18 = vld [vmem:[#allocation7 + $0x40] sm:$0xff]   ;;  %v1410_v19 = vld [vmem:[#allocation5 + $0x250] ss:$8 sps:$4 sm:$0xff]  }
  0x64   :  { %747 = vmatpush1.bf16.msra.mxu0 %v1344_v15  ;;  %v1404_v15 = vld [vmem:[#allocation5 + $0x240] ss:$8 sps:$4 sm:$0xff]   ;;  %v1412_v17 = vld [vmem:[#allocation5 + $0x254] ss:$8 sps:$4 sm:$0xff]   ;;  %v1422_v28 = vld [vmem:[#allocation5 + $0x270] ss:$8 sps:$4 sm:$0xff]  }
  0x65   :  { %748 = vmatprep.subr.bf16.mxu0 %v1345_v16  ;;  %704 = vmatpush1.bf16.msra.mxu1 %v1403_v36  ;;  %v1463_v16 = vld [vmem:[#allocation5 + $0xf0] ss:$8 sps:$4 sm:$0xff]   ;;  %v1475_v20 = vld [vmem:[#allocation7] sm:$0xff]   ;;  %v1476_v23 = vld [vmem:[#allocation7 + $0x48] sm:$0xff]  }
  0x66   :  { %705 = vmatprep.subr.bf16.mxu1 %v1407_v37  ;;  %v1477_v25 = vld [vmem:[#allocation7 + $0x8] sm:$0xff]   ;;  %v1479_v29 = vld [vmem:[#allocation7 + $0x10] sm:$0xff]   ;;  %v1481_v33 = vld [vmem:[#allocation7 + $0x18] sm:$0xff]  }
  0x67   :  { %v1428_v32 = vld [vmem:[#allocation5 + $0x280] ss:$8 sps:$4 sm:$0xff]   ;;  %v1434_v36 = vld [vmem:[#allocation5 + $0x290] ss:$8 sps:$4 sm:$0xff]  }
  0x68   :  { %749 = vmatpush1.bf16.msra.mxu0 %v1347_v21  ;;  %v1418_v21 = vld [vmem:[#allocation5 + $0x264] ss:$8 sps:$4 sm:$0xff]  }
  0x69   :  { %750 = vmatprep.subr.bf16.mxu0 %v1348_v24  ;;  %706 = vmatpush1.bf16.msra.mxu1 %v1409_v40  ;;  %v1416_v24 = vld [vmem:[#allocation5 + $0x260] ss:$8 sps:$4 sm:$0xff]   ;;  %v1448_v40 = vld [vmem:[#allocation5 + $0x2b4] ss:$8 sps:$4 sm:$0xff]  }
  0x6a   :  { %707 = vmatprep.subr.bf16.mxu1 %v1413_v41  ;;  %v1483_v37 = vld [vmem:[#allocation7 + $0x20] sm:$0xff]   ;;  %v1446_v41 = vld [vmem:[#allocation5 + $0x2b0] ss:$8 sps:$4 sm:$0xff]  }
  0x6c   :  { %751 = vmatpush1.bf16.msra.mxu0 %v1350_v26  ;;  %v1424_v26 = vld [vmem:[#allocation5 + $0x274] ss:$8 sps:$4 sm:$0xff]  }
  0x6d   :  { %752 = vmatprep.subr.bf16.mxu0 %v1351_v27  ;;  %708 = vmatpush1.bf16.msra.mxu1 %v1415_v44  ;;  %v1478_v27 = vld [vmem:[#allocation7 + $0x50] sm:$0xff]  }
  0x6e   :  { %709 = vmatprep.subr.bf16.mxu1 %v1419_v45  ;;  %v1460_v44 = vld [vmem:[#allocation5 + $0x2d4] ss:$8 sps:$4 sm:$0xff]   ;;  %v1458_v45 = vld [vmem:[#allocation5 + $0x2d0] ss:$8 sps:$4 sm:$0xff]  }
  0x70   :  { %753 = vmatpush1.bf16.msra.mxu0 %v1353_v30  ;;  %v1430_v30 = vld [vmem:[#allocation5 + $0x284] ss:$8 sps:$4 sm:$0xff]  }
  0x71   :  { %754 = vmatprep.subr.bf16.mxu0 %v1354_v31  ;;  %710 = vmatpush1.bf16.msra.mxu1 %v1421_v48  ;;  %v1480_v31 = vld [vmem:[#allocation7 + $0x58] sm:$0xff]  }
  0x72   :  { %711 = vmatprep.subr.bf16.mxu1 %v1425_v49  ;;  %v1471_v48 = vld [vmem:[#allocation5 + $0x2f4] ss:$8 sps:$4 sm:$0xff]   ;;  %v1469_v49 = vld [vmem:[#allocation5 + $0x2f0] ss:$8 sps:$4 sm:$0xff]  }
  0x74   :  { %755 = vmatpush1.bf16.msra.mxu0 %v1356_v34  ;;  %v1436_v34 = vld [vmem:[#allocation5 + $0x294] ss:$8 sps:$4 sm:$0xff]  }
  0x75   :  { %756 = vmatprep.subr.bf16.mxu0 %v1357_v35  ;;  %712 = vmatpush1.bf16.msra.mxu1 %v1427_v52  ;;  %v1482_v35 = vld [vmem:[#allocation7 + $0x60] sm:$0xff]   ;;  %v1485_v52 = vld [vmem:[#allocation7 + $0x28] sm:$0xff]  }
  0x76   :  { %713 = vmatprep.subr.bf16.mxu1 %v1431_v53  ;;  %v1486_v53 = vld [vmem:[#allocation7 + $0x70] sm:$0xff]  }
  0x78   :  { %757 = vmatpush1.bf16.msra.mxu0 %v1359_v38  ;;  %v1442_v38 = vld [vmem:[#allocation5 + $0x2a4] ss:$8 sps:$4 sm:$0xff]  }
  0x79   :  { %758 = vmatprep.subr.bf16.mxu0 %v1360_v39  ;;  %714 = vmatpush1.bf16.msra.mxu1 %v1433_v56  ;;  %v1440_v39 = vld [vmem:[#allocation5 + $0x2a0] ss:$8 sps:$4 sm:$0xff]   ;;  %v1489_v56 = vld [vmem:[#allocation7 + $0x38] sm:$0xff]  }
  0x7a   :  { %715 = vmatprep.subr.bf16.mxu1 %v1437_v57  ;;  %v1624_v57 = vmov 0.0  }
  0x7c   :  { %759 = vmatpush1.bf16.msra.mxu0 %v1362_v42  ;;  %v1454_v42 = vld [vmem:[#allocation5 + $0x2c4] ss:$8 sps:$4 sm:$0xff]  }
  0x7d   :  { %760 = vmatprep.subr.bf16.mxu0 %v1363_v43  ;;  %716 = vmatpush1.bf16.msra.mxu1 %v1439_v60  ;;  %v1452_v43 = vld [vmem:[#allocation5 + $0x2c0] ss:$8 sps:$4 sm:$0xff]  }
  0x7e   :  { %717 = vmatprep.subr.bf16.mxu1 %v1443_v63 }
  0x80   :  { %761 = vmatpush1.bf16.msra.mxu0 %v1365_v46  ;;  %v1466_v46 = vld [vmem:[#allocation5 + $0x2e4] ss:$8 sps:$4 sm:$0xff]  }
  0x81   :  { %762 = vmatprep.subr.bf16.mxu0 %v1366_v47  ;;  %718 = vmatpush1.bf16.msra.mxu1 %v1445_v5  ;;  %v1464_v47 = vld [vmem:[#allocation5 + $0x2e0] ss:$8 sps:$4 sm:$0xff]  }
  0x82   :  { %719 = vmatprep.subr.bf16.mxu1 %v1449_v6 }
  0x84   :  { %763 = vmatpush1.bf16.msra.mxu0 %v1368_v50  ;;  %v1130_v50 = vcombine.low %v1721_v1, %v1721_v1  ;;  %v180_v1 = vld [vmem:[%s1750_s2] sm:$0x3] }
  0x85   :  { %764 = vmatprep.subr.bf16.mxu0 %v1372_v51  ;;  %720 = vmatpush1.bf16.msra.mxu1 %v1451_v9  ;;  %v1484_v51 = vld [vmem:[#allocation7 + $0x68] sm:$0xff]  }
  0x86   :  { %721 = vmatprep.subr.bf16.mxu1 %v1455_v10 }
  0x88   :  { %765 = vmatpush1.bf16.msra.mxu0 %v1374_v54  ;;  %v1487_v54 = vld [vmem:[#allocation7 + $0x30] sm:$0xff]  }
  0x89   :  { %775 = vmatprep.subr.bf16.mxu0 %v1382_v55  ;;  %722 = vmatpush1.bf16.msra.mxu1 %v1457_v13  ;;  %v1488_v55 = vld [vmem:[#allocation7 + $0x78] sm:$0xff]  }
  0x8a   :  { %723 = vmatprep.subr.bf16.mxu1 %v1461_v14 }
  0x8b   :  { %767 = vmatmul.mubr.bf16.vlgmr.msra.gmra.mrb[0].mxu0 %v1128_v58 }
  0x8c   :  { %776 = vmatpush1.bf16.msra.mxu0 %v1380_v59  ;;  %807 = vmatprep.mubr.bf16.mxu0 %v1131_v3 }
  0x8d   :  { %777 = vmatprep.subr.bf16.mxu0 %v1388_v62  ;;  %724 = vmatpush1.bf16.msra.mxu1 %v1463_v16  ;;  %v182_v62 = vlaneseq  ;;  %v1490_v16 = vld [vmem:[#allocation8] sm:$0xff]  }
  0x8e   :  { %1254 = vmatprep.subr.bf16.mxu1 %v1474_v18  ;;  %v1491_v18 = vld [vmem:[#allocation8 + $0x8] sm:$0xff]  }
  0x8f   :  { %v183_v63 = vshrl.u32 %v182_v62, 7 }
  0x90   :  { %778 = vmatpush1.bf16.msra.mxu0 %v1386_v2  ;;  %726 = vmatmul.mubr.bf16.vlgmr.msra.gmra.mrb[0].mxu1 %v1126_v22  ;;  %v1495_v22 = vld [vmem:[#allocation8 + $0x28] sm:$0xff]  }
  0x91   :  { %779 = vmatprep.subr.bf16.mxu0 %v1394_v4  ;;  %1255 = vmatpush3.bf16.msra.mxu1 %v1475_v20  ;;  %v184_v0 = vsub.s32 0, %v183_v63  ;;  %v188_v2 = vsub.s32 1, %v183_v63  ;;  %v1493_v20 = vld [vmem:[#allocation8 + $0x18] sm:$0xff]  }
  0x92   :  { %1256 = vmatprep.subr.bf16.mxu1 %v1476_v23  ;;  %v1496_v23 = vld [vmem:[#allocation8 + $0x30] sm:$0xff]  }
  0x93   :  { %v185_v3 = vrot.slane %v180_v1, %v184_v0  ;;  %v189_v4 = vrot.slane %v180_v1, %v188_v2 }
  0x94   :  { %780 = vmatpush1.bf16.msra.mxu0 %v1392_v7 }
  0x95   :  { %781 = vmatprep.subr.bf16.mxu0 %v1400_v8  ;;  %1257 = vmatpush3.bf16.msra.mxu1 %v1477_v25 }
  0x96   :  { %1258 = vmatprep.subr.bf16.mxu1 %v1478_v27 }
  0x98   :  { %782 = vmatpush1.bf16.msra.mxu0 %v1398_v11 }
  0x99   :  { %783 = vmatprep.subr.bf16.mxu0 %v1406_v12  ;;  %1259 = vmatpush3.bf16.msra.mxu1 %v1479_v29 }
  0x9a   :  { %1260 = vmatprep.subr.bf16.mxu1 %v1480_v31 }
  0x9c   :  { %784 = vmatpush1.bf16.msra.mxu0 %v1404_v15 }
  0x9d   :  { %785 = vmatprep.subr.bf16.mxu0 %v1412_v17  ;;  %1261 = vmatpush3.bf16.msra.mxu1 %v1481_v33 }
  0x9e   :  { %1262 = vmatprep.subr.bf16.mxu1 %v1482_v35 }
  0xa0   :  { %786 = vmatpush1.bf16.msra.mxu0 %v1410_v19  ;;  %v1492_v19 = vld [vmem:[#allocation8 + $0x10] sm:$0xff]  }
  0xa1   :  { %787 = vmatprep.subr.bf16.mxu0 %v1418_v21  ;;  %1263 = vmatpush3.bf16.msra.mxu1 %v1483_v37  ;;  %v1494_v21 = vld [vmem:[#allocation8 + $0x20] sm:$0xff]  }
  0xa2   :  { %1264 = vmatprep.subr.bf16.mxu1 %v1484_v51 }
  0xa4   :  { %788 = vmatpush1.bf16.msra.mxu0 %v1416_v24  ;;  %v1497_v24 = vld [vmem:[#allocation8 + $0x38] sm:$0xff]  }
  0xa5   :  { %789 = vmatprep.subr.bf16.mxu0 %v1424_v26  ;;  %1265 = vmatpush3.bf16.msra.mxu1 %v1485_v52  ;;  %v1228_v26 = vld [vmem:[%s1752_s4] ss:$0 sm:$0xff]  ;;  %s1586_s4 = scalar_lea.vmem %s1116_s8, 128 }
  0xa6   :  { %1266 = vmatprep.subr.bf16.mxu1 %v1486_v53  ;;  %p1587_p4 = scmp.ne.s32.totalorder %s1116_s8, %s1586_s4  ;;  %p1592_p6 = scmp.lt.s32.totalorder %s1586_s4, %s1586_s4 }
  0xa8   :  { %790 = vmatpush1.bf16.msra.mxu0 %v1422_v28  ;;  %p1593_p7 = por %p1592_p6, %p1591_p5 }
  0xa9   :  { %791 = vmatprep.subr.bf16.mxu0 %v1430_v30  ;;  %1267 = vmatpush3.bf16.msra.mxu1 %v1487_v54 }
  0xaa   :  { %1268 = vmatprep.subr.bf16.mxu1 %v1488_v55  ;;  %p1594_p8 = pnand %p1593_p7, %p1587_p4 }
  0xac   :  { %792 = vmatpush1.bf16.msra.mxu0 %v1428_v32 }
  0xad   :  { %793 = vmatprep.subr.bf16.mxu0 %v1436_v34  ;;  %1269 = vmatpush3.bf16.msra.mxu1 %v1489_v56  ;;  %v1245_v34 = vld [vmem:[%s1754_s6] ss:$0 sm:$0xff] }
  0xae   :  { %1285 = vmatprep.subr.bf16.mxu1 %v1624_v57 }
  0xb0   :  { %794 = vmatpush1.bf16.msra.mxu0 %v1434_v36 }
  0xb1   :  { %795 = vmatprep.subr.bf16.mxu0 %v1442_v38 }
  0xb4   :  { %796 = vmatpush1.bf16.msra.mxu0 %v1440_v39 }
  0xb5   :  { %797 = vmatprep.subr.bf16.mxu0 %v1448_v40 }
  0xb8   :  { %798 = vmatpush1.bf16.msra.mxu0 %v1446_v41 }
  0xb9   :  { %799 = vmatprep.subr.bf16.mxu0 %v1454_v42 }
  0xbc   :  { %800 = vmatpush1.bf16.msra.mxu0 %v1452_v43 }
  0xbd   :  { %801 = vmatprep.subr.bf16.mxu0 %v1460_v44 }
  0xc0   :  { %802 = vmatpush1.bf16.msra.mxu0 %v1458_v45 }
  0xc1   :  { %803 = vmatprep.subr.bf16.mxu0 %v1466_v46 }
  0xc4   :  { %804 = vmatpush1.bf16.msra.mxu0 %v1464_v47 }
  0xc5   :  { %805 = vmatprep.subr.bf16.mxu0 %v1471_v48 }
  0xc8   :  { %806 = vmatpush1.bf16.msra.mxu0 %v1469_v49 }
  0xcb   :  { %808 = vmatmul.mubr.bf16.vlgmr.msra.gmra.mrb[0].mxu0 %v1130_v50 }
 0x163   :  { %v727_v58 = vpop.f32.mrb[0].mxu1 }
 0x164   :  { %v729_v59 = vpop.f32.mrb[1].mxu1  ;;  %v728_v5 = vadd.f32 %v727_v58, %v185_v3 }
 0x165   :  { %v731_v60 = vpop.f32.mrb[2].mxu1  ;;  %v730_v6 = vadd.f32 %v729_v59, %v189_v4 }
 0x166   :  { %v732_v61 = vpop.f32.mrb[3].mxu1 }
 0x19e   :  { %v809_v7 = vpop.f32.mrb[0].mxu0 }
 0x19f   :  { %v1306_v8 = vadd.f32 %v809_v7, %v728_v5  ;;  %v811_v9 = vpop.f32.mrb[1].mxu0 }
 0x1a0   :  { %v1308_v10 = vadd.f32 %v811_v9, %v730_v6  ;;  %v813_v11 = vpop.f32.mrb[2].mxu0 }
 0x1a1   :  { %v816_v12 = vmax.f32 %v1306_v8, 0.0  ;;  %v814_v13 = vpop.f32.mrb[3].mxu0 }
 0x1a2   :  { %v817_v14 = vmax.f32 %v1308_v10, 0.0 }
 0x1a3   :  { %v818_v17 = vpack.c.bf16 %v816_v12, %v816_v12 }
 0x1a4   :  { %v819_v15 = vpack.c.bf16 %v817_v14, %v817_v14 }
 0x1a6   :  { %987 = vmatprep.mubr.bf16.mxu1 %v819_v15 }
 0x1a7   :  { %988 = vmatmul.mubr.bf16.vlgmr.msra.gmra.mrb[4].mxu1 %v818_v17 }
 0x1a8   :  { %1286 = vmatpush3.bf16.msra.mxu1 %v1490_v16  ;;  %1301 = vmatprep.mubr.msk.bf16.mxu1 %vm1625_vm0, %v1624_v57 }
 0x1a9   :  { %1287 = vmatprep.subr.bf16.mxu1 %v1624_v57 }
 0x1ac   :  { %1288 = vmatpush3.bf16.msra.mxu1 %v1491_v18 }
 0x1ad   :  { %1289 = vmatprep.subr.bf16.mxu1 %v1624_v57 }
 0x1b0   :  { %1290 = vmatpush3.bf16.msra.mxu1 %v1492_v19 }
 0x1b1   :  { %1291 = vmatprep.subr.bf16.mxu1 %v1624_v57 }
 0x1b4   :  { %1292 = vmatpush3.bf16.msra.mxu1 %v1493_v20 }
 0x1b5   :  { %1293 = vmatprep.subr.bf16.mxu1 %v1624_v57 }
 0x1b8   :  { %1294 = vmatpush3.bf16.msra.mxu1 %v1494_v21 }
 0x1b9   :  { %1295 = vmatprep.subr.bf16.mxu1 %v1624_v57 }
 0x1bc   :  { %1296 = vmatpush3.bf16.msra.mxu1 %v1495_v22 }
 0x1bd   :  { %1297 = vmatprep.subr.bf16.mxu1 %v1624_v57 }
 0x1c0   :  { %1298 = vmatpush3.bf16.msra.mxu1 %v1496_v23 }
 0x1c1   :  { %1299 = vmatprep.subr.bf16.mxu1 %v1624_v57 }
 0x1c4   :  { %1300 = vmatpush3.bf16.msra.mxu1 %v1497_v24 }
 0x27a   :  { %v1270_v25 = vpop.f32.mrb[4].mxu1 }
 0x27b   :  { %v1271_v27 = vpop.f32.mrb[5].mxu1 }
 0x27c   :  { %v1272_v28 = vadd.f32 %v1271_v27, %v1270_v25  ;;  %v1273_v29 = vpop.f32.mrb[6].mxu1 }
 0x27d   :  { %v1274_v30 = vpop.f32.mrb[7].mxu1 }
 0x27e   :  { %v990_v31 = vadd.f32 %v1272_v28, %v1228_v26 }
 0x280   :  { %v995_v32 = vmax.f32 %v990_v31, 0.0 }
 0x282   :  { %v996_v33 = vpack.c.bf16 %v995_v32, %v995_v32 }
 0x284   :  { %1302 = vmatmul.mubr.bf16.vlgmr.msra.gmra.mrb[8].mxu1 %v996_v33 }
 0x357   :  { %v1102_v35 = vpop.f32.mrb[8].mxu1 }
 0x358   :  { %v1103_v36 = vadd.f32 %v1245_v34, %v1102_v35  ;;  %v1303_v37 = vpop.f32.mrb[9].mxu1 }
 0x359   :  { %v1105_v38 = vpop.f32.mrb[10].mxu1 }
 0x35a   :  { %1108 = vst [vmem:[#allocation10] sm:$0xff] %v1103_v36  ;;  %v1304_v39 = vpop.f32.mrb[11].mxu1 }
 0x35b   :  { %1597 = shalt.err (!%p1594_p8)
}
 0x35c   :  { %s1598_s6 = scalar_lea.hbm %s1755_s7, 128 }
 0x35d   :  { %p1599_p9 = scmp.ne.s32.totalorder %s1755_s7, %s1598_s6  ;;  %p1602_p10 = scmp.lt.u32.totalorder %s1598_s6, %s1755_s7 }
 0x35f   :  { %p1604_p11 = pnand %p1602_p10, %p1599_p9 }
 0x361   :  { %1607 = shalt.err (!%p1604_p11)
}
 0x362   :  { %1118 = dma.vmem_to_hbm [thread:$0]  %s1116_s8, 128, %s1755_s7, [#allocation4]  }
 0x363   :  { %1614 = dma.done.wait [#allocation4], 128  }
 0x364   :  { %1615 = vsyncadd [#allocation4], 4294967168 }
 0x365   :  { %1122 = vsyncpa [#allocation3], 1 }
 0x366   :  { %1123 = vsyncpa [#allocation6], 1 }
 0x367   :  { %1124 = vsyncpa [#allocation9], 1 }
 0x368   :  { %1125 = vsyncpa [#allocation4], 1 }

</bundles_post_ra>
